<compile_context>
chip_gen: v6e
topology: v6e:2x2x1
jax: 0.10.0
libtpu: 0.0.40
codegen_flags: <defaults>
</compile_context>

<pallas_src>
import jax
import jax.numpy as jnp
from jax.experimental import pallas as pl
from jax.experimental.pallas import tpu as pltpu


LANE = 128


def _round_up(x, m):
    return ((x + m - 1) // m) * m


def mlp_kernel(x_ref,
               w1_ref, b1_ref,
               w2_ref, b2_ref,
               w3_ref, b3_ref,
               w4_ref, b4_ref,
               out_ref):
    cdt = w1_ref.dtype
    x = x_ref[...].astype(cdt)                       # (TM, F) f32 -> bf16 in-kernel

    # ----- encoder -----
    h = jnp.dot(x, w1_ref[...], preferred_element_type=jnp.float32) + b1_ref[...]
    h = jnp.maximum(h, 0.0)                          # ReLU
    # Dropout(0.9): identity in eval mode
    z = jnp.dot(h.astype(cdt), w2_ref[...],
                preferred_element_type=jnp.float32) + b2_ref[...]

    # ----- decoder -----
    d = jnp.dot(z.astype(cdt), w3_ref[...],
                preferred_element_type=jnp.float32) + b3_ref[...]
    d = jnp.maximum(d, 0.0)                          # ReLU
    # Dropout(0.5): identity in eval mode
    out_ref[...] = (jnp.dot(d.astype(cdt), w4_ref[...],
                            preferred_element_type=jnp.float32)
                    + b4_ref[...]).astype(out_ref.dtype)


def prepare_params(params, compute_dtype=jnp.bfloat16):
    """Pad feature dims to 128 lanes and cast weights to the MXU dtype ONCE.

    Call this once and reuse the result across forward calls (avoids an extra
    full weight read/write per call). w1's contraction dim is kept at the raw
    input_size so x never needs to be padded/materialized.
    """
    def pad2(a, rows, cols, dtype):
        buf = jnp.zeros((rows, cols), dtype)
        return buf.at[:a.shape[0], :a.shape[1]].set(a.astype(dtype))

    F,  H1 = params["w1"].shape
    _,  I  = params["w2"].shape
    _,  H2 = params["w3"].shape
    _,  O  = params["w4"].shape
    H1_p, I_p, H2_p, O_p = (_round_up(d, LANE) for d in (H1, I, H2, O))

    return dict(
        w1=pad2(params["w1"], F,    H1_p, compute_dtype),
        b1=pad2(params["b1"], 1,    H1_p, jnp.float32),
        w2=pad2(params["w2"], H1_p, I_p,  compute_dtype),
        b2=pad2(params["b2"], 1,    I_p,  jnp.float32),
        w3=pad2(params["w3"], I_p,  H2_p, compute_dtype),
        b3=pad2(params["b3"], 1,    H2_p, jnp.float32),
        w4=pad2(params["w4"], H2_p, O_p,  compute_dtype),
        b4=pad2(params["b4"], 1,    O_p,  jnp.float32),
        O=O,                                         # unpadded output width (python int)
    )


def mlp_forward(x, pp, *, tile_m=None, out_dtype=jnp.float32):
    """x: [B, input_size] float32. pp: output of prepare_params()."""
    B, F = x.shape
    assert pp["w1"].shape[0] == F, "input_size mismatch with prepared params"
    H1_p = pp["w1"].shape[1]
    I_p  = pp["w2"].shape[1]
    H2_p = pp["w3"].shape[1]
    O_p  = pp["w4"].shape[1]
    O    = pp["O"]

    # --- hardware-aware budgets --------------------------------------------
    try:
        vmem_cap = int(pltpu.get_tpu_info().vmem_capacity_bytes)
    except Exception:
        vmem_cap = 64 * 1024 * 1024                  # conservative (v7x per-TC)

    if tile_m is None:
        # 128 MiB parts (v5e/v6e) can afford 512-row tiles; v7x (64 MiB) keeps 256.
        tile_m = 512 if vmem_cap >= 96 * 1024 * 1024 else 256

    # --- batch tiling: pad only to 8 sublanes, cdiv grid (no TM-sized waste) -
    B_pad = _round_up(B, 8)
    if B_pad != B:
        x = jnp.pad(x, ((0, B_pad - B), (0, 0)))

    if B_pad >= 16:
        # at least 2 blocks so megacore ("parallel") has something to shard (v7x)
        TM = min(tile_m, _round_up((B_pad + 1) // 2, 8))
    else:
        TM = B_pad
    grid = (pl.cdiv(B_pad, TM),)

    # --- VMEM budget (weights single-buffered, x/out double-buffered) --------
    cd_bytes = jnp.dtype(pp["w1"].dtype).itemsize
    w_bytes = (pp["w1"].size + pp["w2"].size + pp["w3"].size + pp["w4"].size) * cd_bytes
    b_bytes = (pp["b1"].size + pp["b2"].size + pp["b3"].size + pp["b4"].size) * 4
    x_bytes = TM * F * jnp.dtype(x.dtype).itemsize * 2
    o_bytes = TM * O_p * jnp.dtype(out_dtype).itemsize * 2
    act_bytes = TM * (F + 2 * (H1_p + I_p + H2_p)) * 4
    budget = int((w_bytes + b_bytes + x_bytes + o_bytes + act_bytes) * 5 // 4) + (4 << 20)
    vmem_limit = max(min(budget, vmem_cap - (8 << 20)), 32 << 20)

    # --- specs ----------------------------------------------------------------
    def stream_spec(shape):
        return pl.BlockSpec(shape, lambda i: (i, 0))          # batch-tiled, pipelined

    def resident_spec(shape):
        # constant index_map -> same block every step; single-buffer it so the
        # resident weights/biases don't pay the default double-buffer VMEM tax.
        return pl.BlockSpec(shape, lambda i: (0, 0), pipeline_mode=pl.Buffered(1))

    in_specs = [
        stream_spec((TM, F)),                                 # last dim = full extent (F)
        resident_spec(pp["w1"].shape), resident_spec(pp["b1"].shape),
        resident_spec(pp["w2"].shape), resident_spec(pp["b2"].shape),
        resident_spec(pp["w3"].shape), resident_spec(pp["b3"].shape),
        resident_spec(pp["w4"].shape), resident_spec(pp["b4"].shape),
    ]
    out_specs = stream_spec((TM, O_p))

    flops = 2 * B_pad * (F * H1_p + H1_p * I_p + I_p * H2_p + H2_p * O_p)
    bytes_accessed = (B_pad * F * jnp.dtype(x.dtype).itemsize
                      + w_bytes + b_bytes
                      + B_pad * O_p * jnp.dtype(out_dtype).itemsize)

    out = pl.pallas_call(
        mlp_kernel,
        out_shape=jax.ShapeDtypeStruct((B_pad, O_p), out_dtype),
        grid=grid,
        in_specs=in_specs,
        out_specs=out_specs,
        compiler_params=pltpu.CompilerParams(
            dimension_semantics=("parallel",),
            vmem_limit_bytes=vmem_limit,
        ),
        cost_estimate=pl.CostEstimate(
            flops=flops, transcendentals=0, bytes_accessed=bytes_accessed),
    )(x, pp["w1"], pp["b1"], pp["w2"], pp["b2"], pp["w3"], pp["b3"], pp["w4"], pp["b4"])

    return out[:B, :O]


def init_params(key, input_size, intermediate_size, output_size):
    """Deterministic synthetic init. PyTorch Linear weights are [out, in];
    stored transposed ([in, out]) for the kernel."""
    def linear(key, fan_in, fan_out):
        kw, kb = jax.random.split(key)
        bound = 1.0 / (fan_in ** 0.5)
        w = jax.random.uniform(kw, (fan_in, fan_out), jnp.float32, -bound, bound)
        b = jax.random.uniform(kb, (1, fan_out), jnp.float32, -bound, bound)
        return w, b

    k1, k2, k3, k4 = jax.random.split(key, 4)
    w1, b1 = linear(k1, input_size, 512)
    w2, b2 = linear(k2, 512, intermediate_size)
    w3, b3 = linear(k3, intermediate_size, 128)
    w4, b4 = linear(k4, 128, output_size)
    return dict(w1=w1, b1=b1, w2=w2, b2=b2, w3=w3, b3=b3, w4=w4, b4=b4)


def mlp_reference(x, p, compute_dtype=jnp.bfloat16):
    """Pure-JAX reference mirroring the kernel numerics (bf16 operands, f32 accumulate)."""
    c = lambda a: a.astype(compute_dtype)
    h = jnp.dot(c(x), c(p["w1"]), preferred_element_type=jnp.float32) + p["b1"]
    h = jnp.maximum(h, 0.0)
    z = jnp.dot(c(h), c(p["w2"]), preferred_element_type=jnp.float32) + p["b2"]
    d = jnp.dot(c(z), c(p["w3"]), preferred_element_type=jnp.float32) + p["b3"]
    d = jnp.maximum(d, 0.0)
    return jnp.dot(c(d), c(p["w4"]), preferred_element_type=jnp.float32) + p["b4"]


if __name__ == "__main__":
    key = jax.random.PRNGKey(0)
    k_x, k_p = jax.random.split(key)

    batch = 8
    input_size = 64
    intermediate_size = 32
    output_size = 16

    x = jax.random.normal(k_x, (batch, input_size), jnp.float32)
    params = init_params(k_p, input_size, intermediate_size, output_size)

    pp = prepare_params(params)          # pad + bf16-cast once, reuse every call
    out = mlp_forward(x, pp)
    out = jax.block_until_ready(out)

    ref = mlp_reference(x, params)
    assert out.shape == (batch, output_size)
    assert jnp.allclose(out, ref, atol=2e-3, rtol=2e-3), float(jnp.max(jnp.abs(out - ref)))

    print("KERNEL_OK")
</pallas_src>

<mosaic_0001>
module attributes {stable_mosaic.version = 11 : i64} {
  func.func @mlp_kernel(%arg0: i32, %arg1: memref<8x64xf32, #tpu.memory_space<vmem>>, %arg2: memref<64x512xbf16, #tpu.memory_space<vmem>>, %arg3: memref<1x512xf32, #tpu.memory_space<vmem>>, %arg4: memref<512x128xbf16, #tpu.memory_space<vmem>>, %arg5: memref<1x128xf32, #tpu.memory_space<vmem>>, %arg6: memref<128x128xbf16, #tpu.memory_space<vmem>>, %arg7: memref<1x128xf32, #tpu.memory_space<vmem>>, %arg8: memref<128x128xbf16, #tpu.memory_space<vmem>>, %arg9: memref<1x128xf32, #tpu.memory_space<vmem>>, %arg10: memref<8x128xf32, #tpu.memory_space<vmem>>) attributes {dimension_semantics = [#tpu.dimension_semantics<parallel>], iteration_bounds = array<i64: 1>, scalar_prefetch = 0 : i64, scratch_operands = 0 : i64, tpu.core_type = #tpu.core_type<tc>, window_params = [{transform_indices = @transform_0, window_bounds = array<i64: 8, 64>}, {pipeline_mode = #tpu.pipeline_mode<synchronous>, transform_indices = @transform_1, window_bounds = array<i64: 64, 512>}, {pipeline_mode = #tpu.pipeline_mode<synchronous>, transform_indices = @transform_2, window_bounds = array<i64: 1, 512>}, {pipeline_mode = #tpu.pipeline_mode<synchronous>, transform_indices = @transform_3, window_bounds = array<i64: 512, 128>}, {pipeline_mode = #tpu.pipeline_mode<synchronous>, transform_indices = @transform_4, window_bounds = array<i64: 1, 128>}, {pipeline_mode = #tpu.pipeline_mode<synchronous>, transform_indices = @transform_5, window_bounds = array<i64: 128, 128>}, {pipeline_mode = #tpu.pipeline_mode<synchronous>, transform_indices = @transform_6, window_bounds = array<i64: 1, 128>}, {pipeline_mode = #tpu.pipeline_mode<synchronous>, transform_indices = @transform_7, window_bounds = array<i64: 128, 128>}, {pipeline_mode = #tpu.pipeline_mode<synchronous>, transform_indices = @transform_8, window_bounds = array<i64: 1, 128>}, {transform_indices = @transform_9, window_bounds = array<i64: 8, 128>}]} {
    %c0 = arith.constant 0 : index
    %c0_0 = arith.constant 0 : index
    %0 = vector.load %arg1[%c0, %c0_0] : memref<8x64xf32, #tpu.memory_space<vmem>>, vector<8x64xf32>
    %1 = arith.truncf %0 : vector<8x64xf32> to vector<8x64xbf16>
    %c0_1 = arith.constant 0 : index
    %c0_2 = arith.constant 0 : index
    %2 = vector.load %arg2[%c0_1, %c0_2] : memref<64x512xbf16, #tpu.memory_space<vmem>>, vector<64x512xbf16>
    %cst = arith.constant dense<0.000000e+00> : vector<8x512xf32>
    %3 = tpu.matmul %1, %2, %cst {dimension_numbers = #tpu.dot_dimension_numbers<[1], [0], [0], [1], [0, 0, 1, 1], [], []>} : vector<8x64xbf16>, vector<64x512xbf16>, vector<8x512xf32> -> vector<8x512xf32>
    %c0_3 = arith.constant 0 : index
    %c0_4 = arith.constant 0 : index
    %4 = vector.load %arg3[%c0_3, %c0_4] : memref<1x512xf32, #tpu.memory_space<vmem>>, vector<1x512xf32>
    %5 = vector.broadcast %4 : vector<1x512xf32> to vector<8x512xf32>
    %6 = arith.addf %3, %5 : vector<8x512xf32>
    %cst_5 = arith.constant 0.000000e+00 : f32
    %7 = vector.broadcast %cst_5 : f32 to vector<8x512xf32>
    %8 = arith.maximumf %6, %7 : vector<8x512xf32>
    %9 = arith.truncf %8 : vector<8x512xf32> to vector<8x512xbf16>
    %c0_6 = arith.constant 0 : index
    %c0_7 = arith.constant 0 : index
    %10 = vector.load %arg4[%c0_6, %c0_7] : memref<512x128xbf16, #tpu.memory_space<vmem>>, vector<512x128xbf16>
    %cst_8 = arith.constant dense<0.000000e+00> : vector<8x128xf32>
    %11 = tpu.matmul %9, %10, %cst_8 {dimension_numbers = #tpu.dot_dimension_numbers<[1], [0], [0], [1], [0, 0, 1, 1], [], []>} : vector<8x512xbf16>, vector<512x128xbf16>, vector<8x128xf32> -> vector<8x128xf32>
    %c0_9 = arith.constant 0 : index
    %c0_10 = arith.constant 0 : index
    %12 = vector.load %arg5[%c0_9, %c0_10] : memref<1x128xf32, #tpu.memory_space<vmem>>, vector<1x128xf32>
    %13 = vector.broadcast %12 : vector<1x128xf32> to vector<8x128xf32>
    %14 = arith.addf %11, %13 : vector<8x128xf32>
    %15 = arith.truncf %14 : vector<8x128xf32> to vector<8x128xbf16>
    %c0_11 = arith.constant 0 : index
    %c0_12 = arith.constant 0 : index
    %16 = vector.load %arg6[%c0_11, %c0_12] : memref<128x128xbf16, #tpu.memory_space<vmem>>, vector<128x128xbf16>
    %cst_13 = arith.constant dense<0.000000e+00> : vector<8x128xf32>
    %17 = tpu.matmul %15, %16, %cst_13 {dimension_numbers = #tpu.dot_dimension_numbers<[1], [0], [0], [1], [0, 0, 1, 1], [], []>} : vector<8x128xbf16>, vector<128x128xbf16>, vector<8x128xf32> -> vector<8x128xf32>
    %c0_14 = arith.constant 0 : index
    %c0_15 = arith.constant 0 : index
    %18 = vector.load %arg7[%c0_14, %c0_15] : memref<1x128xf32, #tpu.memory_space<vmem>>, vector<1x128xf32>
    %19 = vector.broadcast %18 : vector<1x128xf32> to vector<8x128xf32>
    %20 = arith.addf %17, %19 : vector<8x128xf32>
    %cst_16 = arith.constant 0.000000e+00 : f32
    %21 = vector.broadcast %cst_16 : f32 to vector<8x128xf32>
    %22 = arith.maximumf %20, %21 : vector<8x128xf32>
    %23 = arith.truncf %22 : vector<8x128xf32> to vector<8x128xbf16>
    %c0_17 = arith.constant 0 : index
    %c0_18 = arith.constant 0 : index
    %24 = vector.load %arg8[%c0_17, %c0_18] : memref<128x128xbf16, #tpu.memory_space<vmem>>, vector<128x128xbf16>
    %cst_19 = arith.constant dense<0.000000e+00> : vector<8x128xf32>
    %25 = tpu.matmul %23, %24, %cst_19 {dimension_numbers = #tpu.dot_dimension_numbers<[1], [0], [0], [1], [0, 0, 1, 1], [], []>} : vector<8x128xbf16>, vector<128x128xbf16>, vector<8x128xf32> -> vector<8x128xf32>
    %c0_20 = arith.constant 0 : index
    %c0_21 = arith.constant 0 : index
    %26 = vector.load %arg9[%c0_20, %c0_21] : memref<1x128xf32, #tpu.memory_space<vmem>>, vector<1x128xf32>
    %27 = vector.broadcast %26 : vector<1x128xf32> to vector<8x128xf32>
    %28 = arith.addf %25, %27 : vector<8x128xf32>
    %c0_22 = arith.constant 0 : index
    %c0_23 = arith.constant 0 : index
    %29 = vector.load %arg10[%c0_22, %c0_23] : memref<8x128xf32, #tpu.memory_space<vmem>>, vector<8x128xf32>
    tpu.vector_store %arg10[%c0_22, %c0_23], %28 {strides = array<i32>} : memref<8x128xf32, #tpu.memory_space<vmem>>, vector<8x128xf32>,
    return
  }
  func.func @transform_0(%arg0: i32) -> (i32, i32) {
    %c0_i32 = arith.constant 0 : i32
    %c0_i32_0 = arith.constant 0 : i32
    return %arg0, %c0_i32 : i32, i32
  }
  func.func @transform_1(%arg0: i32) -> (i32, i32) {
    %c0_i32 = arith.constant 0 : i32
    %c0_i32_0 = arith.constant 0 : i32
    %c0_i32_1 = arith.constant 0 : i32
    return %c0_i32, %c0_i32_0 : i32, i32
  }
  func.func @transform_2(%arg0: i32) -> (i32, i32) {
    %c0_i32 = arith.constant 0 : i32
    %c0_i32_0 = arith.constant 0 : i32
    %c0_i32_1 = arith.constant 0 : i32
    return %c0_i32, %c0_i32_0 : i32, i32
  }
  func.func @transform_3(%arg0: i32) -> (i32, i32) {
    %c0_i32 = arith.constant 0 : i32
    %c0_i32_0 = arith.constant 0 : i32
    %c0_i32_1 = arith.constant 0 : i32
    return %c0_i32, %c0_i32_0 : i32, i32
  }
  func.func @transform_4(%arg0: i32) -> (i32, i32) {
    %c0_i32 = arith.constant 0 : i32
    %c0_i32_0 = arith.constant 0 : i32
    %c0_i32_1 = arith.constant 0 : i32
    return %c0_i32, %c0_i32_0 : i32, i32
  }
  func.func @transform_5(%arg0: i32) -> (i32, i32) {
    %c0_i32 = arith.constant 0 : i32
    %c0_i32_0 = arith.constant 0 : i32
    %c0_i32_1 = arith.constant 0 : i32
    return %c0_i32, %c0_i32_0 : i32, i32
  }
  func.func @transform_6(%arg0: i32) -> (i32, i32) {
    %c0_i32 = arith.constant 0 : i32
    %c0_i32_0 = arith.constant 0 : i32
    %c0_i32_1 = arith.constant 0 : i32
    return %c0_i32, %c0_i32_0 : i32, i32
  }
  func.func @transform_7(%arg0: i32) -> (i32, i32) {
    %c0_i32 = arith.constant 0 : i32
    %c0_i32_0 = arith.constant 0 : i32
    %c0_i32_1 = arith.constant 0 : i32
    return %c0_i32, %c0_i32_0 : i32, i32
  }
  func.func @transform_8(%arg0: i32) -> (i32, i32) {
    %c0_i32 = arith.constant 0 : i32
    %c0_i32_0 = arith.constant 0 : i32
    %c0_i32_1 = arith.constant 0 : i32
    return %c0_i32, %c0_i32_0 : i32, i32
  }
  func.func @transform_9(%arg0: i32) -> (i32, i32) {
    %c0_i32 = arith.constant 0 : i32
    %c0_i32_0 = arith.constant 0 : i32
    return %arg0, %c0_i32 : i32, i32
  }
}

</mosaic_0001>

<bundles_post_ra>
// kernel: tpu_custom_call.1
= control target key start
LH: loop header
LB: loop body
LE: loop exit
PB: predicated region body
PF: predicated region fallthrough
CT: control target
= control target key end

     0   :  { %14 = vsyncpa [#allocation3], 0  ;;  %s1441_s0 = inlined_call_operand.hbm [shape: f32[8,64], index: 0, kind: input, shape index: {}]   ;;  %s1442_s1 = inlined_call_operand.hbm [shape: bf16[64,512], index: 1, kind: input, shape index: {}]   ;;  %s1443_s2 = inlined_call_operand.hbm [shape: f32[1,512], index: 2, kind: input, shape index: {}]   ;;  %s1444_s3 = inlined_call_operand.hbm [shape: bf16[512,128], index: 3, kind: input, shape index: {}]   ;;  %s1445_s4 = inlined_call_operand.vmem [shape: f32[1,128], index: 4, kind: input, shape index: {}]   ;;  %s1446_s5 = inlined_call_operand.hbm [shape: bf16[128,128], index: 5, kind: input, shape index: {}]   ;;  %s1447_s6 = inlined_call_operand.vmem [shape: f32[1,128], index: 6, kind: input, shape index: {}]   ;;  %s1448_s7 = inlined_call_operand.hbm [shape: bf16[128,128], index: 7, kind: input, shape index: {}]   ;;  %s1449_s8 = inlined_call_operand.vmem [shape: f32[1,128], index: 8, kind: input, shape index: {}]   ;;  %s1450_s9 = inlined_call_operand.hbm [shape: f32[8,128], index: 9, kind: output, shape index: {}]  }
   0x1   :  { %15 = vsyncpa [#allocation6], 0 }
   0x2   :  { %16 = vsyncpa [#allocation9], 0 }
   0x3   :  { %17 = vsyncpa [#allocation12], 0 }
   0x4   :  { %18 = vsyncpa [#allocation4], 0  ;;  %s1320_s30 = smov [#allocation5]  }
   0x5   :  { %s34_s10 = sshll.u32 %s1320_s30, 4  ;;  %s35_s10 = int_to_ptr.vmem [resolvable:$true] %s34_s10 }
   0x6   :  { %s1178_s11 = scalar_lea.vmem %s35_s10, 2048  ;;  %p1183_p1 = scmp.lt.s32.totalorder %s35_s10, %s35_s10 }
   0x7   :  { %p1179_p0 = scmp.ne.s32.totalorder %s35_s10, %s1178_s11  ;;  %p1184_p2 = scmp.lt.s32.totalorder %s1178_s11, %s1178_s11 }
   0x9   :  { %p1185_p3 = por %p1184_p2, %p1183_p1 }
   0xb   :  { %p1186_p4 = pnand %p1185_p3, %p1179_p0 }
   0xd   :  { %1189 = shalt.err (!%p1186_p4)
}
   0xe   :  { %s1321_s12 = smov 256   ;;  %s1322_s13 = smov 16  }
   0xf   :  { %40 = dma.hbm_to_vmem [thread:$0]  %s1442_s1, 2048, %s35_s10, [#allocation6], %s1321_s12, %s1321_s12, %s1322_s13  }
  0x10   :  { %s1323_s16 = smov [#allocation8]  }
  0x11   :  { %s56_s17 = sshll.u32 %s1323_s16, 4  ;;  %s57_s17 = int_to_ptr.vmem [resolvable:$true] %s56_s17 }
  0x12   :  { %s1198_s18 = scalar_lea.vmem %s57_s17, 4096  ;;  %p1203_p6 = scmp.lt.s32.totalorder %s57_s17, %s57_s17 }
  0x13   :  { %p1199_p5 = scmp.ne.s32.totalorder %s57_s17, %s1198_s18  ;;  %p1204_p7 = scmp.lt.s32.totalorder %s1198_s18, %s1198_s18 }
  0x15   :  { %p1205_p8 = por %p1204_p7, %p1203_p6 }
  0x17   :  { %p1206_p9 = pnand %p1205_p8, %p1199_p5 }
  0x19   :  { %1209 = shalt.err (!%p1206_p9)
}
  0x1a   :  { %s1324_s19 = smov 64   ;;  %s1325_s20 = smov 4  }
  0x1b   :  { %62 = dma.hbm_to_vmem [thread:$0]  %s1444_s3, 4096, %s57_s17, [#allocation9], %s1324_s19, %s1324_s19, %s1325_s20  }
  0x1c   :  { %s1326_s1 = smov [#allocation2]   ;;  %s1327_s24 = smov [#allocation7]  }
  0x1d   :  { %s25_s23 = sshll.u32 %s1326_s1, 4  ;;  %s47_s25 = sshll.u32 %s1327_s24, 4  ;;  %s26_s23 = int_to_ptr.vmem [resolvable:$true] %s25_s23  ;;  %s48_s25 = int_to_ptr.vmem [resolvable:$true] %s47_s25 }
  0x1e   :  { %s1218_s26 = scalar_lea.vmem %s26_s23, 128  ;;  %p1223_p11 = scmp.lt.s32.totalorder %s26_s23, %s26_s23 }
  0x1f   :  { %p1219_p10 = scmp.ne.s32.totalorder %s26_s23, %s1218_s26  ;;  %p1224_p12 = scmp.lt.s32.totalorder %s1218_s26, %s1218_s26 }
  0x21   :  { %p1225_p13 = por %p1224_p12, %p1223_p11 }
  0x23   :  { %p1226_p0 = pnand %p1225_p13, %p1219_p10 }
  0x25   :  { %1229 = shalt.err (!%p1226_p0)
}
  0x26   :  { %28 = dma.hbm_to_vmem [thread:$0]  %s1441_s0, 128, %s26_s23, [#allocation3]  }
  0x27   :  { %s1238_s29 = scalar_lea.vmem %s48_s25, 64  ;;  %p1243_p2 = scmp.lt.s32.totalorder %s48_s25, %s48_s25 }
  0x28   :  { %p1239_p1 = scmp.ne.s32.totalorder %s48_s25, %s1238_s29  ;;  %p1244_p3 = scmp.lt.s32.totalorder %s1238_s29, %s1238_s29 }
  0x2a   :  { %p1245_p4 = por %p1244_p3, %p1243_p2 }
  0x2c   :  { %p1246_p5 = pnand %p1245_p4, %p1239_p1 }
  0x2e   :  { %1249 = shalt.err (!%p1246_p5)
}
  0x2f   :  { %50 = dma.hbm_to_vmem [thread:$0]  %s1443_s2, 64, %s48_s25, [#allocation6]  }
  0x30   :  { %s1328_s10 = smov [#allocation10]   ;;  %s1329_s12 = smov [#allocation11]  }
  0x31   :  { %s70_s11 = sshll.u32 %s1328_s10, 4  ;;  %s84_s13 = sshll.u32 %s1329_s12, 4  ;;  %s71_s11 = int_to_ptr.vmem [resolvable:$true] %s70_s11  ;;  %s85_s13 = int_to_ptr.vmem [resolvable:$true] %s84_s13 }
  0x32   :  { %s1258_s14 = scalar_lea.vmem %s71_s11, 1024  ;;  %p1263_p7 = scmp.lt.s32.totalorder %s71_s11, %s71_s11 }
  0x33   :  { %p1259_p6 = scmp.ne.s32.totalorder %s71_s11, %s1258_s14  ;;  %p1264_p8 = scmp.lt.s32.totalorder %s1258_s14, %s1258_s14 }
  0x35   :  { %p1265_p9 = por %p1264_p8, %p1263_p7 }
  0x37   :  { %p1266_p10 = pnand %p1265_p9, %p1259_p6 }
  0x39   :  { %1269 = shalt.err (!%p1266_p10)
}
  0x3a   :  { %76 = dma.hbm_to_vmem [thread:$0]  %s1446_s5, 1024, %s71_s11, [#allocation9], %s1324_s19, %s1324_s19, %s1325_s20  }
  0x3b   :  { %s1278_s2 = scalar_lea.vmem %s85_s13, 1024  ;;  %p1283_p12 = scmp.lt.s32.totalorder %s85_s13, %s85_s13 }
  0x3c   :  { %p1279_p11 = scmp.ne.s32.totalorder %s85_s13, %s1278_s2  ;;  %p1284_p13 = scmp.lt.s32.totalorder %s1278_s2, %s1278_s2 }
  0x3e   :  { %p1285_p0 = por %p1284_p13, %p1283_p12 }
  0x40   :  { %p1286_p1 = pnand %p1285_p0, %p1279_p11 }
  0x42   :  { %1289 = shalt.err (!%p1286_p1)
}
  0x43   :  { %90 = dma.hbm_to_vmem [thread:$0]  %s1448_s7, 1024, %s85_s13, [#allocation12], %s1324_s19, %s1324_s19, %s1325_s20  }
  0x44   :  { %1310 = dma.done.wait [#allocation3], 128  }
  0x45   :  { %1311 = vsyncadd [#allocation3], 4294967168 }
  0x46   :  { %1312 = dma.done.wait [#allocation6], 2112  }
  0x47   :  { %1313 = vsyncadd [#allocation6], 4294965184 }
  0x48   :  { %1314 = dma.done.wait [#allocation9], 5120  }
  0x49   :  { %1315 = vsyncadd [#allocation9], 4294962176 }
  0x4a   :  { %1316 = dma.done.wait [#allocation12], 1024  }
  0x4b   :  { %1317 = vsyncadd [#allocation12], 4294966272  ;;  %v1330_v0 = vmov 0   ;;  %v1098_v1 = vld [vmem:[#allocation5 + $0x64] ss:$16 sps:$4 sm:$0xff]   ;;  %v112_v17 = vld [vmem:[#allocation2] sm:$0xff]  ;;  %v132_v52 = vlaneseq }
  0x4c   :  { %268 = vmatprep.mubr.bf16.mxu0 %v1330_v0  ;;  %309 = vmatprep.mubr.bf16.mxu1 %v1330_v0  ;;  %v1100_v2 = vld [vmem:[#allocation5 + $0x6c] ss:$16 sps:$4 sm:$0xff]   ;;  %v1102_v3 = vld [vmem:[#allocation5 + $0x60] ss:$16 sps:$4 sm:$0xff]   ;;  %v1103_v4 = vld [vmem:[#allocation5 + $0x68] ss:$16 sps:$4 sm:$0xff]   ;;  %v113_v21 = vpack.c.bf16 %v112_v17, %v112_v17 }
  0x4d   :  { %244 = vmatprep.subr.bf16.mxu0 %v1098_v1  ;;  %285 = vmatprep.subr.bf16.mxu1 %v1100_v2  ;;  %v1104_v5 = vld [vmem:[#allocation5 + $0x44] ss:$16 sps:$4 sm:$0xff]   ;;  %v1106_v6 = vld [vmem:[#allocation5 + $0x4c] ss:$16 sps:$4 sm:$0xff]   ;;  %v1108_v7 = vld [vmem:[#allocation5 + $0x40] ss:$16 sps:$4 sm:$0xff]  }
  0x4e   :  { %245 = vmatpush1.bf16.msra.mxu0 %v1102_v3  ;;  %286 = vmatpush1.bf16.msra.mxu1 %v1103_v4  ;;  %v1109_v8 = vld [vmem:[#allocation5 + $0x48] ss:$16 sps:$4 sm:$0xff]   ;;  %v1110_v9 = vld [vmem:[#allocation5 + $0x24] ss:$16 sps:$4 sm:$0xff]   ;;  %v1112_v10 = vld [vmem:[#allocation5 + $0x2c] ss:$16 sps:$4 sm:$0xff]  }
  0x4f   :  { %246 = vmatprep.subr.bf16.mxu0 %v1104_v5  ;;  %287 = vmatprep.subr.bf16.mxu1 %v1106_v6  ;;  %v1114_v11 = vld [vmem:[#allocation5 + $0x20] ss:$16 sps:$4 sm:$0xff]   ;;  %v1115_v12 = vld [vmem:[#allocation5 + $0x28] ss:$16 sps:$4 sm:$0xff]   ;;  %v1116_v13 = vld [vmem:[#allocation5 + $0x4] ss:$16 sps:$4 sm:$0xff]  }
  0x50   :  { %v1118_v14 = vld [vmem:[#allocation5 + $0xc] ss:$16 sps:$4 sm:$0xff]   ;;  %v1120_v15 = vld [vmem:[#allocation5] ss:$16 sps:$4 sm:$0xff]   ;;  %v1121_v16 = vld [vmem:[#allocation5 + $0x8] ss:$16 sps:$4 sm:$0xff]  }
  0x51   :  { %v1122_v18 = vld [vmem:[#allocation8 + $0x78] sm:$0xff]   ;;  %vm232_vm0 = vcmask 523264   ;;  %v1126_v23 = vld [vmem:[#allocation8 + $0x70] sm:$0xff]   ;;  %v1130_v27 = vld [vmem:[#allocation8 + $0x68] sm:$0xff]   ;;  %v1331_v51 = vmov 0.0   ;;  %v133_v53 = vshrl.u32 %v132_v52, 7 }
  0x52   :  { %247 = vmatpush1.bf16.msra.mxu0 %v1108_v7  ;;  %288 = vmatpush1.bf16.msra.mxu1 %v1109_v8  ;;  %v1123_v19 = vld [vmem:[#allocation8 + $0xf8] sm:$0xff]   ;;  %v1127_v24 = vld [vmem:[#allocation8 + $0xf0] sm:$0xff]   ;;  %v1131_v28 = vld [vmem:[#allocation8 + $0xe8] sm:$0xff]   ;;  %vm1332_vm1 = vmmov 0   ;;  %s1333_s21 = smov [#allocation13]  }
  0x53   :  { %248 = vmatprep.subr.bf16.mxu0 %v1110_v9  ;;  %289 = vmatprep.subr.bf16.mxu1 %v1112_v10  ;;  %v1124_v20 = vld [vmem:[#allocation8 + $0x38] sm:$0xff]   ;;  %v1128_v25 = vld [vmem:[#allocation8 + $0x30] sm:$0xff]   ;;  %v1132_v29 = vld [vmem:[#allocation8 + $0x28] sm:$0xff]   ;;  %v134_v54 = vsub.s32 0, %v133_v53  ;;  %v142_v55 = vsub.s32 2, %v133_v53  ;;  %v138_v57 = vsub.s32 1, %v133_v53 }
  0x54   :  { %v1125_v22 = vld [vmem:[#allocation8 + $0xb8] sm:$0xff]   ;;  %v1129_v26 = vld [vmem:[#allocation8 + $0xb0] sm:$0xff]   ;;  %v1133_v30 = vld [vmem:[#allocation8 + $0xa8] sm:$0xff]   ;;  %v146_v58 = vsub.s32 3, %v133_v53  ;;  %s901_s22 = sshll.u32 %s1333_s21, 4  ;;  %s902_s22 = int_to_ptr.vmem [resolvable:$true] %s901_s22 }
  0x55   :  { %v1134_v31 = vld [vmem:[#allocation8 + $0x60] sm:$0xff]   ;;  %v1138_v35 = vld [vmem:[#allocation8 + $0x58] sm:$0xff]   ;;  %v1142_v39 = vld [vmem:[#allocation8 + $0x50] sm:$0xff]   ;;  %p1295_p3 = scmp.lt.s32.totalorder %s902_s22, %s902_s22 }
  0x56   :  { %249 = vmatpush1.bf16.msra.mxu0 %v1114_v11  ;;  %290 = vmatpush1.bf16.msra.mxu1 %v1115_v12  ;;  %v1135_v32 = vld [vmem:[#allocation8 + $0xe0] sm:$0xff]   ;;  %v1139_v36 = vld [vmem:[#allocation8 + $0xd8] sm:$0xff]   ;;  %v1143_v40 = vld [vmem:[#allocation8 + $0xd0] sm:$0xff]  }
  0x57   :  { %250 = vmatprep.subr.bf16.mxu0 %v1116_v13  ;;  %291 = vmatprep.subr.bf16.mxu1 %v1118_v14  ;;  %v1136_v33 = vld [vmem:[#allocation8 + $0x20] sm:$0xff]   ;;  %v1140_v37 = vld [vmem:[#allocation8 + $0x18] sm:$0xff]   ;;  %v1144_v41 = vld [vmem:[#allocation8 + $0x10] sm:$0xff]  }
  0x58   :  { %v1137_v34 = vld [vmem:[#allocation8 + $0xa0] sm:$0xff]   ;;  %v1141_v38 = vld [vmem:[#allocation8 + $0x98] sm:$0xff]   ;;  %v1145_v42 = vld [vmem:[#allocation8 + $0x90] sm:$0xff]  }
  0x59   :  { %v1146_v43 = vld [vmem:[#allocation8 + $0x48] sm:$0xff]   ;;  %v1150_v47 = vld [vmem:[#allocation8 + $0x40] sm:$0xff]   ;;  %v130_v56 = vld [vmem:[#allocation7] sm:$0xf] }
  0x5a   :  { %251 = vmatpush1.bf16.msra.mxu0 %v1120_v15  ;;  %292 = vmatpush1.bf16.msra.mxu1 %v1121_v16  ;;  %v1147_v44 = vld [vmem:[#allocation8 + $0xc8] sm:$0xff]   ;;  %v1151_v48 = vld [vmem:[#allocation8 + $0xc0] sm:$0xff]   ;;  %v135_v59 = vrot.slane %v130_v56, %v134_v54  ;;  %v143_v60 = vrot.slane %v130_v56, %v142_v55  ;;  %v139_v61 = vrot.slane %v130_v56, %v138_v57 }
  0x5b   :  { %982 = vmatprep.subr.bf16.mxu0 %v1122_v18  ;;  %1004 = vmatprep.subr.bf16.mxu1 %v1123_v19  ;;  %v1148_v45 = vld [vmem:[#allocation8 + $0x8] sm:$0xff]   ;;  %v1152_v49 = vld [vmem:[#allocation8] sm:$0xff]   ;;  %v147_v62 = vrot.slane %v130_v56, %v146_v58  ;;  %v1154_v18 = vld [vmem:[#allocation10 + $0x38] sm:$0xff]  }
  0x5c   :  { %v1149_v46 = vld [vmem:[#allocation8 + $0x88] sm:$0xff]   ;;  %v1153_v50 = vld [vmem:[#allocation8 + $0x80] sm:$0xff]   ;;  %v973_v58 = vld [vmem:[%s1449_s8] ss:$0 sm:$0xff] }
  0x5d   :  { %929 = vmatmul.mubr.msk.bf16.vlgmr.msra.gmra.mxu0 %vm232_vm0, %v113_v21  ;;  %930 = vmatmul.mubr.msk.bf16.vlgmr.msra.gmra.mxu1 %vm232_vm0, %v113_v21  ;;  %v1156_v21 = vld [vmem:[#allocation10 + $0x28] sm:$0xff]  }
  0x5e   :  { %983 = vmatpush3.bf16.msra.mxu0 %v1124_v20  ;;  %1005 = vmatpush3.bf16.msra.mxu1 %v1125_v22  ;;  %v1155_v20 = vld [vmem:[#allocation10 + $0x30] sm:$0xff]   ;;  %v1157_v22 = vld [vmem:[#allocation10 + $0x20] sm:$0xff]  }
  0x5f   :  { %984 = vmatprep.subr.bf16.mxu0 %v1126_v23  ;;  %1006 = vmatprep.subr.bf16.mxu1 %v1127_v24  ;;  %v1158_v23 = vld [vmem:[#allocation10 + $0x18] sm:$0xff]   ;;  %v1159_v24 = vld [vmem:[#allocation10 + $0x10] sm:$0xff]  }
  0x62   :  { %985 = vmatpush3.bf16.msra.mxu0 %v1128_v25  ;;  %1007 = vmatpush3.bf16.msra.mxu1 %v1129_v26  ;;  %v1160_v25 = vld [vmem:[#allocation10 + $0x8] sm:$0xff]   ;;  %v1161_v26 = vld [vmem:[#allocation10] sm:$0xff]  }
  0x63   :  { %986 = vmatprep.subr.bf16.mxu0 %v1130_v27  ;;  %1008 = vmatprep.subr.bf16.mxu1 %v1131_v28  ;;  %v1162_v27 = vld [vmem:[#allocation11 + $0x38] sm:$0xff]   ;;  %v1163_v28 = vld [vmem:[#allocation11 + $0x30] sm:$0xff]  }
  0x66   :  { %987 = vmatpush3.bf16.msra.mxu0 %v1132_v29  ;;  %1009 = vmatpush3.bf16.msra.mxu1 %v1133_v30  ;;  %v1164_v29 = vld [vmem:[#allocation11 + $0x28] sm:$0xff]   ;;  %v1165_v30 = vld [vmem:[#allocation11 + $0x20] sm:$0xff]  }
  0x67   :  { %988 = vmatprep.subr.bf16.mxu0 %v1134_v31  ;;  %1010 = vmatprep.subr.bf16.mxu1 %v1135_v32  ;;  %v1166_v31 = vld [vmem:[#allocation11 + $0x18] sm:$0xff]   ;;  %v1167_v32 = vld [vmem:[#allocation11 + $0x10] sm:$0xff]  }
  0x6a   :  { %989 = vmatpush3.bf16.msra.mxu0 %v1136_v33  ;;  %1011 = vmatpush3.bf16.msra.mxu1 %v1137_v34 }
  0x6b   :  { %990 = vmatprep.subr.bf16.mxu0 %v1138_v35  ;;  %1012 = vmatprep.subr.bf16.mxu1 %v1139_v36  ;;  %v931_v35 = vld [vmem:[%s1445_s4] ss:$0 sm:$0xff] }
  0x6e   :  { %991 = vmatpush3.bf16.msra.mxu0 %v1140_v37  ;;  %1013 = vmatpush3.bf16.msra.mxu1 %v1141_v38 }
  0x6f   :  { %992 = vmatprep.subr.bf16.mxu0 %v1142_v39  ;;  %1014 = vmatprep.subr.bf16.mxu1 %v1143_v40 }
  0x72   :  { %993 = vmatpush3.bf16.msra.mxu0 %v1144_v41  ;;  %1015 = vmatpush3.bf16.msra.mxu1 %v1145_v42 }
  0x73   :  { %994 = vmatprep.subr.bf16.mxu0 %v1146_v43  ;;  %1016 = vmatprep.subr.bf16.mxu1 %v1147_v44 }
  0x76   :  { %995 = vmatpush3.bf16.msra.mxu0 %v1148_v45  ;;  %1017 = vmatpush3.bf16.msra.mxu1 %v1149_v46 }
  0x77   :  { %996 = vmatprep.subr.bf16.mxu0 %v1150_v47  ;;  %1018 = vmatprep.subr.bf16.mxu1 %v1151_v48  ;;  %v1168_v47 = vld [vmem:[#allocation11 + $0x8] sm:$0xff]   ;;  %v1169_v48 = vld [vmem:[#allocation11] sm:$0xff]  }
  0x7a   :  { %997 = vmatpush3.bf16.msra.mxu0 %v1152_v49  ;;  %1019 = vmatpush3.bf16.msra.mxu1 %v1153_v50  ;;  %v964_v49 = vld [vmem:[%s1447_s6] ss:$0 sm:$0xff]  ;;  %s1290_s6 = scalar_lea.vmem %s902_s22, 128 }
  0x7b   :  { %1044 = vmatprep.subr.bf16.mxu0 %v1331_v51  ;;  %1064 = vmatprep.subr.bf16.mxu1 %v1331_v51  ;;  %p1291_p2 = scmp.ne.s32.totalorder %s902_s22, %s1290_s6  ;;  %p1296_p4 = scmp.lt.s32.totalorder %s1290_s6, %s1290_s6 }
  0x7d   :  { %p1297_p5 = por %p1296_p4, %p1295_p3 }
  0x7f   :  { %p1298_p6 = pnand %p1297_p5, %p1291_p2 }
 0x11d   :  { %v270_v63 = vpop.f32.mrf.mxu0  ;;  %v311_v0 = vpop.f32.mrf.mxu1 }
 0x11e   :  { %v271_v1 = vadd.f32 %v270_v63, %v135_v59  ;;  %v312_v2 = vadd.f32 %v311_v0, %v143_v60 }
 0x11f   :  { %v272_v3 = vpop.f32.mrf.mxu0  ;;  %v313_v4 = vpop.f32.mrf.mxu1 }
 0x120   :  { %v320_v5 = vmax.f32 %v312_v2, 0.0  ;;  %v273_v6 = vadd.f32 %v272_v3, %v139_v61  ;;  %v314_v7 = vadd.f32 %v313_v4, %v147_v62  ;;  %v318_v8 = vmax.f32 %v271_v1, 0.0 }
 0x121   :  { %v274_v9 = vpop.f32.mrf.mxu0  ;;  %v315_v10 = vpop.f32.mrf.mxu1 }
 0x122   :  { %v319_v11 = vmax.f32 %v273_v6, 0.0  ;;  %v321_v12 = vmax.f32 %v314_v7, 0.0  ;;  %v324_v13 = vpack.c.bf16 %v320_v5, %v320_v5  ;;  %v322_v19 = vpack.c.bf16 %v318_v8, %v318_v8 }
 0x123   :  { %v275_v14 = vpop.f32.mrf.mxu0  ;;  %v316_v15 = vpop.f32.mrf.mxu1 }
 0x124   :  { %v323_v16 = vpack.c.bf16 %v319_v11, %v319_v11  ;;  %v325_v17 = vpack.c.bf16 %v321_v12, %v321_v12 }
 0x126   :  { %621 = vmatprep.mubr.bf16.mxu0 %v323_v16  ;;  %661 = vmatprep.mubr.bf16.mxu1 %v325_v17 }
 0x127   :  { %622 = vmatmul.mubr.bf16.vlgmr.msra.gmra.mxu0 %v322_v19  ;;  %662 = vmatmul.mubr.bf16.vlgmr.msra.gmra.mxu1 %v324_v13 }
 0x128   :  { %1045 = vmatpush3.bf16.msra.mxu0 %v1154_v18  ;;  %1060 = vmatprep.mubr.msk.bf16.mxu0 %vm1332_vm1, %v1331_v51 }
 0x129   :  { %1046 = vmatprep.subr.bf16.mxu0 %v1331_v51  ;;  %1080 = vmatprep.mubr.msk.bf16.mxu1 %vm1332_vm1, %v1331_v51 }
 0x12a   :  { %1065 = vmatpush3.bf16.msra.mxu1 %v1162_v27 }
 0x12b   :  { %1066 = vmatprep.subr.bf16.mxu1 %v1331_v51 }
 0x12c   :  { %1047 = vmatpush3.bf16.msra.mxu0 %v1155_v20 }
 0x12d   :  { %1048 = vmatprep.subr.bf16.mxu0 %v1331_v51 }
 0x12e   :  { %1067 = vmatpush3.bf16.msra.mxu1 %v1163_v28 }
 0x12f   :  { %1068 = vmatprep.subr.bf16.mxu1 %v1331_v51 }
 0x130   :  { %1049 = vmatpush3.bf16.msra.mxu0 %v1156_v21 }
 0x131   :  { %1050 = vmatprep.subr.bf16.mxu0 %v1331_v51 }
 0x132   :  { %1069 = vmatpush3.bf16.msra.mxu1 %v1164_v29 }
 0x133   :  { %1070 = vmatprep.subr.bf16.mxu1 %v1331_v51 }
 0x134   :  { %1051 = vmatpush3.bf16.msra.mxu0 %v1157_v22 }
 0x135   :  { %1052 = vmatprep.subr.bf16.mxu0 %v1331_v51 }
 0x136   :  { %1071 = vmatpush3.bf16.msra.mxu1 %v1165_v30 }
 0x137   :  { %1072 = vmatprep.subr.bf16.mxu1 %v1331_v51 }
 0x138   :  { %1053 = vmatpush3.bf16.msra.mxu0 %v1158_v23 }
 0x139   :  { %1054 = vmatprep.subr.bf16.mxu0 %v1331_v51 }
 0x13a   :  { %1073 = vmatpush3.bf16.msra.mxu1 %v1166_v31 }
 0x13b   :  { %1074 = vmatprep.subr.bf16.mxu1 %v1331_v51 }
 0x13c   :  { %1055 = vmatpush3.bf16.msra.mxu0 %v1159_v24 }
 0x13d   :  { %1056 = vmatprep.subr.bf16.mxu0 %v1331_v51 }
 0x13e   :  { %1075 = vmatpush3.bf16.msra.mxu1 %v1167_v32 }
 0x13f   :  { %1076 = vmatprep.subr.bf16.mxu1 %v1331_v51 }
 0x140   :  { %1057 = vmatpush3.bf16.msra.mxu0 %v1160_v25 }
 0x141   :  { %1058 = vmatprep.subr.bf16.mxu0 %v1331_v51 }
 0x142   :  { %1077 = vmatpush3.bf16.msra.mxu1 %v1168_v47 }
 0x143   :  { %1078 = vmatprep.subr.bf16.mxu1 %v1331_v51 }
 0x144   :  { %1059 = vmatpush3.bf16.msra.mxu0 %v1161_v26 }
 0x146   :  { %1079 = vmatpush3.bf16.msra.mxu1 %v1169_v48 }
 0x1e7   :  { %v998_v33 = vpop.f32.mrf.mxu0  ;;  %v1020_v34 = vpop.f32.mrf.mxu1 }
 0x1e9   :  { %v999_v36 = vpop.f32.mrf.mxu0  ;;  %v1021_v37 = vpop.f32.mrf.mxu1 }
 0x1ea   :  { %v1000_v38 = vadd.f32 %v999_v36, %v998_v33  ;;  %v1022_v42 = vadd.f32 %v1021_v37, %v1020_v34 }
 0x1eb   :  { %v1001_v39 = vpop.f32.mrf.mxu0  ;;  %v1023_v40 = vpop.f32.mrf.mxu1 }
 0x1ec   :  { %v624_v41 = vadd.f32 %v1000_v38, %v931_v35 }
 0x1ed   :  { %v1002_v43 = vpop.f32.mrf.mxu0  ;;  %v1024_v44 = vpop.f32.mrf.mxu1 }
 0x1ee   :  { %v664_v45 = vadd.f32 %v1022_v42, %v624_v41 }
 0x1f0   :  { %v669_v46 = vpack.c.bf16 %v664_v45, %v664_v45 }
 0x1f2   :  { %1061 = vmatmul.mubr.bf16.vlgmr.msra.gmra.mxu0 %v669_v46 }
 0x2b2   :  { %v775_v50 = vpop.f32.mrf.mxu0 }
 0x2b3   :  { %v776_v52 = vadd.f32 %v964_v49, %v775_v50 }
 0x2b4   :  { %v1062_v53 = vpop.f32.mrf.mxu0 }
 0x2b5   :  { %v781_v54 = vmax.f32 %v776_v52, 0.0 }
 0x2b6   :  { %v778_v55 = vpop.f32.mrf.mxu0 }
 0x2b7   :  { %v782_v56 = vpack.c.bf16 %v781_v54, %v781_v54 }
 0x2b8   :  { %v1063_v57 = vpop.f32.mrf.mxu0 }
 0x2b9   :  { %1081 = vmatmul.mubr.bf16.vlgmr.msra.gmra.mxu1 %v782_v56 }
 0x379   :  { %v888_v51 = vpop.f32.mrf.mxu1 }
 0x37a   :  { %v889_v59 = vadd.f32 %v973_v58, %v888_v51 }
 0x37b   :  { %v1082_v60 = vpop.f32.mrf.mxu1 }
 0x37c   :  { %894 = vst [vmem:[#allocation13] sm:$0xff] %v889_v59 }
 0x37d   :  { %v891_v61 = vpop.f32.mrf.mxu1 }
 0x37e   :  { %1301 = shalt.err (!%p1298_p6)
}
 0x37f   :  { %904 = dma.vmem_to_hbm [thread:$0]  %s902_s22, 128, %s1450_s9, [#allocation4]   ;;  %v1083_v62 = vpop.f32.mrf.mxu1 }
 0x380   :  { %1318 = dma.done.wait [#allocation4], 128  }
 0x381   :  { %1319 = vsyncadd [#allocation4], 4294967168 }
 0x382   :  { %908 = vsyncpa [#allocation3], 1 }
 0x383   :  { %909 = vsyncpa [#allocation6], 1 }
 0x384   :  { %910 = vsyncpa [#allocation9], 1 }
 0x385   :  { %911 = vsyncpa [#allocation12], 1 }
 0x386   :  { %912 = vsyncpa [#allocation4], 1 }

</bundles_post_ra>
